<compile_context>
chip_gen: v5e
topology: v5e:2x2
jax: 0.10.0
libtpu: 0.0.40
codegen_flags: <defaults>
</compile_context>

<pallas_src>
import math

import jax
import jax.numpy as jnp
from jax.experimental import pallas as pl
from jax.experimental.pallas import tpu as pltpu

# ---- hard-coded irreps configuration (see header) ----
MUL0 = 16                                  # multiplicity of 0e in node input/output
MUL1 = 8                                   # multiplicity of 1e in node input/output
D_IN = MUL0 + 3 * MUL1                     # 40
D_SH = 4                                   # 1x0e + 1x1e
D_SC = 8                                   # edge_scalars channels (fc_neurons[0])
H_RAD = 16                                 # fc_neurons[1]
W_NUMEL = MUL0 + MUL0 + MUL1 + MUL1 + MUL1 # 56 depthwise-TP weights per edge
D_OUT = MUL0 + 3 * MUL1                    # 40
LN_EPS = 1e-5
INV_SQRT3 = 1.0 / math.sqrt(3.0)
INV_SQRT2 = 1.0 / math.sqrt(2.0)


def _round_up(v, m):
    return ((v + m - 1) // m) * m


def _sep_fctp_kernel(x_ref, sh_ref, es_ref, rw1_ref, raff_ref, rw2_ref,
                     roff_ref, lw0_ref, lw1_ref, o_ref):
    """One tile of TE edges (edges on the lane axis, features on sublanes)."""
    f32 = jnp.float32

    # ---------------- RadialProfile: Linear -> LayerNorm -> SiLU -> Linear -> +offset ----
    es = es_ref[...]                                                      # [8, TE]
    h = jnp.dot(rw1_ref[...], es, preferred_element_type=f32)            # [16, TE]
    h = h + raff_ref[:, 0:1]                                              # + bias
    mu = jnp.mean(h, axis=0, keepdims=True)                               # LayerNorm over features
    var = jnp.mean((h - mu) * (h - mu), axis=0, keepdims=True)
    h = (h - mu) * jax.lax.rsqrt(var + LN_EPS)
    h = h * raff_ref[:, 1:2] + raff_ref[:, 2:3]                           # gamma, beta
    h = h * jax.nn.sigmoid(h)                                             # SiLU (EUP)
    w = jnp.dot(rw2_ref[...], h, preferred_element_type=f32) + roff_ref[...]  # [56, TE]

    # ---------------- Depthwise tensor product ('uvu', per-edge weights) -----------------
    x0 = x_ref[0:MUL0, :]                                                 # 16 x 0e
    x1 = [x_ref[MUL0 + MUL1 * m:MUL0 + MUL1 * (m + 1), :] for m in range(3)]  # 8 x 1e, m-major
    sh0 = sh_ref[0:1, :]
    sh1 = [sh_ref[1 + m:2 + m, :] for m in range(3)]

    wA = w[0:16, :]                                                       # 0e*0e -> 0e
    wB = w[16:32, :]                                                      # 0e*1e -> 1e
    wC = w[32:40, :]                                                      # 1e*0e -> 1e
    wD = w[40:48, :]                                                      # 1e*1e -> 0e
    wE = w[48:56, :]                                                      # 1e*1e -> 1e

    out0 = x0 * sh0 * wA                                                  # [16, TE] (0e)
    dot11 = x1[0] * sh1[0] + x1[1] * sh1[1] + x1[2] * sh1[2]
    out1 = dot11 * INV_SQRT3 * wD                                         # [8, TE]  (0e)
    out2 = [x0 * sh1[m] * wB for m in range(3)]                           # 16 x 1e
    out3 = [x1[m] * sh0 * wC for m in range(3)]                           # 8 x 1e
    cr = [x1[1] * sh1[2] - x1[2] * sh1[1],
          x1[2] * sh1[0] - x1[0] * sh1[2],
          x1[0] * sh1[1] - x1[1] * sh1[0]]
    out4 = [cr[m] * INV_SQRT2 * wE for m in range(3)]                     # 8 x 1e

    # ---------------- LinearRS: per-degree dense mixing (bias on 0e only) ----------------
    w0 = lw0_ref[...]                                                     # [16, 25] = [W0 | b0]
    y0 = (jnp.dot(w0[:, 0:16], out0, preferred_element_type=f32)
          + jnp.dot(w0[:, 16:24], out1, preferred_element_type=f32)
          + w0[:, 24:25])
    o_ref[0:MUL0, :] = y0.astype(o_ref.dtype)

    w1 = lw1_ref[...]                                                     # [8, 32]
    for m in range(3):
        y1m = (jnp.dot(w1[:, 0:16], out2[m], preferred_element_type=f32)
               + jnp.dot(w1[:, 16:24], out3[m], preferred_element_type=f32)
               + jnp.dot(w1[:, 24:32], out4[m], preferred_element_type=f32))
        o_ref[MUL0 + MUL1 * m:MUL0 + MUL1 * (m + 1), :] = y1m.astype(o_ref.dtype)


def separable_fctp(node_input, edge_attr, edge_scalars, params):
    """Pallas implementation of SeparableFCTP.forward for the hard-coded irreps config.

    node_input:   [E, 40]  e3nn layout (16 scalars, then 8x1e u-major)
    edge_attr:    [E, 4]   (1x0e + 1x1e spherical harmonics)
    edge_scalars: [E, 8]
    returns:      [E, 40]  e3nn layout
    """
    E = node_input.shape[0]
    assert node_input.shape == (E, D_IN)
    assert edge_attr.shape == (E, D_SH)
    assert edge_scalars.shape == (E, D_SC)

    f32 = jnp.float32
    node_input = node_input.astype(f32)
    edge_attr = edge_attr.astype(f32)
    edge_scalars = edge_scalars.astype(f32)

    # ---- edge-tile size: multiple of 128 lanes; keep >= 2 grid cells when possible (v7x
    # two-TensorCore item), grow to 1024 for large E (per-step-overhead item on v5e/v6e) ----
    e128 = _round_up(E, 128)
    te = 128
    for cand in (1024, 512, 256):
        if e128 >= 2 * cand:
            te = cand
            break
    e_pad = _round_up(E, te)

    # ---- wrapper-side layout plumbing: transpose to [feature, E], 1e block made m-major ----
    x0 = node_input[:, :MUL0]                                             # [E, 16]
    x1 = node_input[:, MUL0:].reshape(E, MUL1, 3)                         # [E, 8, 3] u-major
    x_t = jnp.concatenate(
        [x0.T, jnp.transpose(x1, (2, 1, 0)).reshape(3 * MUL1, E)], axis=0)  # [40, E]
    sh_t = edge_attr.T                                                    # [4, E]
    es_t = edge_scalars.T                                                 # [8, E]
    if e_pad != E:
        pad = ((0, 0), (0, e_pad - E))
        x_t = jnp.pad(x_t, pad)
        sh_t = jnp.pad(sh_t, pad)
        es_t = jnp.pad(es_t, pad)

    # ---- pack the small parameter arrays (DMA'd once, resident in VMEM) ----
    rw1 = params["rad_w1"].astype(f32)                                    # [16, 8]
    raff = jnp.stack([params["rad_b1"], params["ln_g"], params["ln_b"]], axis=1).astype(f32)  # [16, 3]
    rw2 = params["rad_w2"].astype(f32)                                    # [56, 16]
    roff = params["rad_off"].reshape(W_NUMEL, 1).astype(f32)              # [56, 1]
    lw0 = jnp.concatenate([params["lin_w0"], params["lin_b0"][:, None]], axis=1).astype(f32)  # [16, 25]
    lw1 = params["lin_w1"].astype(f32)                                    # [8, 32]

    grid = (e_pad // te,)

    def edge_spec(d):
        return pl.BlockSpec((d, te), lambda i: (0, i))

    def param_spec(shape):
        return pl.BlockSpec(shape, lambda i: (0, 0))

    # Explicit VMEM budget with headroom; never request the whole 64 MiB v7x VMEM.
    buf_bytes = (2 * (D_IN + D_SH + D_SC) * te * 4        # double-buffered input tiles
                 + 2 * D_OUT * te * 4                     # double-buffered output tile
                 + (W_NUMEL + H_RAD + 3 * D_OUT) * te * 4 # in-kernel intermediates
                 + (H_RAD * D_SC + H_RAD * 3 + W_NUMEL * H_RAD + W_NUMEL
                    + MUL0 * 25 + MUL1 * 32) * 4)         # resident parameters
    vmem_limit = int(min(max(4 * buf_bytes, 8 << 20), 48 << 20))

    out_t = pl.pallas_call(
        _sep_fctp_kernel,
        out_shape=jax.ShapeDtypeStruct((D_OUT, e_pad), f32),
        grid_spec=pltpu.PrefetchScalarGridSpec(
            num_scalar_prefetch=0,
            grid=grid,
            in_specs=[
                edge_spec(D_IN),                # node_input (transposed, m-major 1e block)
                edge_spec(D_SH),                # edge_attr  (transposed)
                edge_spec(D_SC),                # edge_scalars (transposed)
                param_spec((H_RAD, D_SC)),      # radial Linear1 weight
                param_spec((H_RAD, 3)),         # radial bias | LN gamma | LN beta
                param_spec((W_NUMEL, H_RAD)),   # radial Linear2 weight
                param_spec((W_NUMEL, 1)),       # radial offset
                param_spec((MUL0, 25)),         # LinearRS 0e weight | bias
                param_spec((MUL1, 32)),         # LinearRS 1e weight
            ],
            out_specs=pl.BlockSpec((D_OUT, te), lambda i: (0, i)),
        ),
        compiler_params=pltpu.CompilerParams(
            dimension_semantics=("parallel",),
            vmem_limit_bytes=vmem_limit,
        ),
    )(x_t, sh_t, es_t, rw1, raff, rw2, roff, lw0, lw1)

    # ---- back to e3nn layout ----
    out_t = out_t[:, :E]
    y0 = out_t[:MUL0, :].T                                                # [E, 16]
    y1 = jnp.transpose(out_t[MUL0:, :].reshape(3, MUL1, E), (2, 1, 0))    # [E, 8, 3]
    return jnp.concatenate([y0, y1.reshape(E, 3 * MUL1)], axis=1)


def _reference(node_input, edge_attr, edge_scalars, p):
    """Pure-JAX reference of the same SeparableFCTP forward (e3nn layout in/out)."""
    E = node_input.shape[0]
    h = edge_scalars @ p["rad_w1"].T + p["rad_b1"]
    mu = h.mean(-1, keepdims=True)
    var = ((h - mu) ** 2).mean(-1, keepdims=True)
    h = (h - mu) / jnp.sqrt(var + LN_EPS) * p["ln_g"] + p["ln_b"]
    h = h * jax.nn.sigmoid(h)
    w = h @ p["rad_w2"].T + p["rad_off"]

    x0 = node_input[:, :MUL0]
    x1 = node_input[:, MUL0:].reshape(E, MUL1, 3)
    sh0 = edge_attr[:, 0:1]
    sh1 = edge_attr[:, 1:4]
    wA = w[:, 0:16]; wB = w[:, 16:32]; wC = w[:, 32:40]; wD = w[:, 40:48]; wE = w[:, 48:56]

    out0 = x0 * sh0 * wA                                                  # [E,16] 0e
    out1 = (x1 * sh1[:, None, :]).sum(-1) * INV_SQRT3 * wD                # [E,8]  0e
    out2 = x0[:, :, None] * sh1[:, None, :] * wB[:, :, None]              # [E,16,3]
    out3 = x1 * sh0[:, :, None] * wC[:, :, None]                          # [E,8,3]
    out4 = (jnp.cross(x1, jnp.broadcast_to(sh1[:, None, :], x1.shape))
            * INV_SQRT2 * wE[:, :, None])                                 # [E,8,3]

    y0 = jnp.concatenate([out0, out1], axis=1) @ p["lin_w0"].T + p["lin_b0"]
    vec = jnp.concatenate([out2, out3, out4], axis=1)                     # [E,32,3]
    y1 = jnp.einsum("ecm,oc->eom", vec, p["lin_w1"])                      # [E,8,3]
    return jnp.concatenate([y0, y1.reshape(E, 3 * MUL1)], axis=1)


if __name__ == "__main__":
    key = jax.random.PRNGKey(0)
    keys = jax.random.split(key, 16)

    def unif(k, shape, scale):
        return jax.random.uniform(k, shape, jnp.float32, -scale, scale)

    params = {
        "rad_w1": unif(keys[3], (H_RAD, D_SC), 1.0 / math.sqrt(D_SC)),
        "rad_b1": unif(keys[4], (H_RAD,), 1.0 / math.sqrt(D_SC)),
        "ln_g": 1.0 + 0.1 * jax.random.normal(keys[5], (H_RAD,), jnp.float32),
        "ln_b": 0.1 * jax.random.normal(keys[6], (H_RAD,), jnp.float32),
        "rad_w2": unif(keys[7], (W_NUMEL, H_RAD), 1.0 / math.sqrt(H_RAD)),
        "rad_off": unif(keys[8], (W_NUMEL,), 1.0 / math.sqrt(H_RAD)),
        "lin_w0": unif(keys[9], (MUL0, MUL0 + MUL1), 1.0 / math.sqrt(MUL0 + MUL1)),
        "lin_b0": unif(keys[10], (MUL0,), 0.1),
        "lin_w1": unif(keys[11], (MUL1, MUL0 + 2 * MUL1), 1.0 / math.sqrt(MUL0 + 2 * MUL1)),
    }

    # Case 1: small unaligned edge count (exercises padding + the 2-tile megacore path).
    E = 200
    node_input = jax.random.normal(keys[0], (E, D_IN), dtype=jnp.float32)
    edge_attr = jax.random.normal(keys[1], (E, D_SH), dtype=jnp.float32)
    edge_scalars = jax.random.normal(keys[2], (E, D_SC), dtype=jnp.float32)
    out = jax.block_until_ready(separable_fctp(node_input, edge_attr, edge_scalars, params))
    ref = _reference(node_input, edge_attr, edge_scalars, params)
    assert out.shape == (E, D_OUT)
    assert jnp.allclose(out, ref, atol=2e-4, rtol=2e-4), float(jnp.max(jnp.abs(out - ref)))

    # Case 2: larger edge count exercising the multi-tile / larger-TE path.
    E2 = 1500
    node_input2 = jax.random.normal(keys[12], (E2, D_IN), dtype=jnp.float32)
    edge_attr2 = jax.random.normal(keys[13], (E2, D_SH), dtype=jnp.float32)
    edge_scalars2 = jax.random.normal(keys[14], (E2, D_SC), dtype=jnp.float32)
    out2 = jax.block_until_ready(separable_fctp(node_input2, edge_attr2, edge_scalars2, params))
    ref2 = _reference(node_input2, edge_attr2, edge_scalars2, params)
    assert out2.shape == (E2, D_OUT)
    assert jnp.allclose(out2, ref2, atol=2e-4, rtol=2e-4), float(jnp.max(jnp.abs(out2 - ref2)))

    print("KERNEL_OK")
</pallas_src>

<mosaic_0001>
module attributes {stable_mosaic.version = 11 : i64} {
  func.func @_sep_fctp_kernel(%arg0: i32, %arg1: memref<40x128xf32, #tpu.memory_space<vmem>>, %arg2: memref<4x128xf32, #tpu.memory_space<vmem>>, %arg3: memref<8x128xf32, #tpu.memory_space<vmem>>, %arg4: memref<16x8xf32, #tpu.memory_space<vmem>>, %arg5: memref<16x3xf32, #tpu.memory_space<vmem>>, %arg6: memref<56x16xf32, #tpu.memory_space<vmem>>, %arg7: memref<56x1xf32, #tpu.memory_space<vmem>>, %arg8: memref<16x25xf32, #tpu.memory_space<vmem>>, %arg9: memref<8x32xf32, #tpu.memory_space<vmem>>, %arg10: memref<40x128xf32, #tpu.memory_space<vmem>>) attributes {dimension_semantics = [#tpu.dimension_semantics<parallel>], iteration_bounds = array<i64: 2>, scalar_prefetch = 0 : i64, scratch_operands = 0 : i64, tpu.core_type = #tpu.core_type<tc>, window_params = [{transform_indices = @transform_0, window_bounds = array<i64: 40, 128>}, {transform_indices = @transform_1, window_bounds = array<i64: 4, 128>}, {transform_indices = @transform_2, window_bounds = array<i64: 8, 128>}, {pipeline_mode = #tpu.pipeline_mode<synchronous>, transform_indices = @transform_3, window_bounds = array<i64: 16, 8>}, {pipeline_mode = #tpu.pipeline_mode<synchronous>, transform_indices = @transform_4, window_bounds = array<i64: 16, 3>}, {pipeline_mode = #tpu.pipeline_mode<synchronous>, transform_indices = @transform_5, window_bounds = array<i64: 56, 16>}, {pipeline_mode = #tpu.pipeline_mode<synchronous>, transform_indices = @transform_6, window_bounds = array<i64: 56, 1>}, {pipeline_mode = #tpu.pipeline_mode<synchronous>, transform_indices = @transform_7, window_bounds = array<i64: 16, 25>}, {pipeline_mode = #tpu.pipeline_mode<synchronous>, transform_indices = @transform_8, window_bounds = array<i64: 8, 32>}, {transform_indices = @transform_9, window_bounds = array<i64: 40, 128>}]} {
    %c0 = arith.constant 0 : index
    %c0_0 = arith.constant 0 : index
    %0 = vector.load %arg3[%c0, %c0_0] : memref<8x128xf32, #tpu.memory_space<vmem>>, vector<8x128xf32>
    %c0_1 = arith.constant 0 : index
    %c0_2 = arith.constant 0 : index
    %1 = vector.load %arg4[%c0_1, %c0_2] : memref<16x8xf32, #tpu.memory_space<vmem>>, vector<16x8xf32>
    %cst = arith.constant dense<0.000000e+00> : vector<16x128xf32>
    %2 = tpu.matmul %1, %0, %cst {dimension_numbers = #tpu.dot_dimension_numbers<[1], [0], [0], [1], [0, 0, 1, 1], [], []>} : vector<16x8xf32>, vector<8x128xf32>, vector<16x128xf32> -> vector<16x128xf32>
    %c0_3 = arith.constant 0 : index
    %c0_4 = arith.constant 0 : index
    %3 = vector.load %arg5[%c0_3, %c0_4] : memref<16x3xf32, #tpu.memory_space<vmem>>, vector<16x1xf32>
    %4 = vector.broadcast %3 : vector<16x1xf32> to vector<16x128xf32>
    %5 = arith.addf %2, %4 : vector<16x128xf32>
    %cst_5 = arith.constant dense<0.000000e+00> : vector<128xf32>
    %6 = vector.multi_reduction <add>, %5, %cst_5 [0] : vector<16x128xf32> to vector<128xf32>
    %7 = vector.shape_cast %6 : vector<128xf32> to vector<1x128xf32>
    %cst_6 = arith.constant 1.600000e+01 : f32
    %8 = vector.broadcast %cst_6 : f32 to vector<1x128xf32>
    %9 = arith.divf %7, %8 : vector<1x128xf32>
    %10 = vector.broadcast %9 : vector<1x128xf32> to vector<16x128xf32>
    %11 = arith.subf %5, %10 : vector<16x128xf32>
    %12 = vector.broadcast %9 : vector<1x128xf32> to vector<16x128xf32>
    %13 = arith.subf %5, %12 : vector<16x128xf32>
    %14 = arith.mulf %11, %13 : vector<16x128xf32>
    %cst_7 = arith.constant dense<0.000000e+00> : vector<128xf32>
    %15 = vector.multi_reduction <add>, %14, %cst_7 [0] : vector<16x128xf32> to vector<128xf32>
    %16 = vector.shape_cast %15 : vector<128xf32> to vector<1x128xf32>
    %cst_8 = arith.constant 1.600000e+01 : f32
    %17 = vector.broadcast %cst_8 : f32 to vector<1x128xf32>
    %18 = arith.divf %16, %17 : vector<1x128xf32>
    %19 = vector.broadcast %9 : vector<1x128xf32> to vector<16x128xf32>
    %20 = arith.subf %5, %19 : vector<16x128xf32>
    %cst_9 = arith.constant 9.99999974E-6 : f32
    %21 = vector.broadcast %cst_9 : f32 to vector<1x128xf32>
    %22 = arith.addf %18, %21 : vector<1x128xf32>
    %23 = math.rsqrt %22 : vector<1x128xf32>
    %24 = vector.broadcast %23 : vector<1x128xf32> to vector<16x128xf32>
    %25 = arith.mulf %20, %24 : vector<16x128xf32>
    %c0_10 = arith.constant 0 : index
    %c1 = arith.constant 1 : index
    %26 = vector.load %arg5[%c0_10, %c1] : memref<16x3xf32, #tpu.memory_space<vmem>>, vector<16x1xf32>
    %27 = vector.broadcast %26 : vector<16x1xf32> to vector<16x128xf32>
    %28 = arith.mulf %25, %27 : vector<16x128xf32>
    %c0_11 = arith.constant 0 : index
    %c2 = arith.constant 2 : index
    %29 = vector.load %arg5[%c0_11, %c2] : memref<16x3xf32, #tpu.memory_space<vmem>>, vector<16x1xf32>
    %30 = vector.broadcast %29 : vector<16x1xf32> to vector<16x128xf32>
    %31 = arith.addf %28, %30 : vector<16x128xf32>
    %32 = arith.negf %31 : vector<16x128xf32>
    %33 = math.exp %32 : vector<16x128xf32>
    %cst_12 = arith.constant 1.000000e+00 : f32
    %34 = vector.broadcast %cst_12 : f32 to vector<16x128xf32>
    %35 = arith.addf %34, %33 : vector<16x128xf32>
    %36 = arith.divf %34, %35 : vector<16x128xf32>
    %37 = arith.mulf %31, %36 : vector<16x128xf32>
    %c0_13 = arith.constant 0 : index
    %c0_14 = arith.constant 0 : index
    %38 = vector.load %arg6[%c0_13, %c0_14] : memref<56x16xf32, #tpu.memory_space<vmem>>, vector<56x16xf32>
    %cst_15 = arith.constant dense<0.000000e+00> : vector<56x128xf32>
    %39 = tpu.matmul %38, %37, %cst_15 {dimension_numbers = #tpu.dot_dimension_numbers<[1], [0], [0], [1], [0, 0, 1, 1], [], []>} : vector<56x16xf32>, vector<16x128xf32>, vector<56x128xf32> -> vector<56x128xf32>
    %c0_16 = arith.constant 0 : index
    %c0_17 = arith.constant 0 : index
    %40 = vector.load %arg7[%c0_16, %c0_17] : memref<56x1xf32, #tpu.memory_space<vmem>>, vector<56x1xf32>
    %41 = vector.broadcast %40 : vector<56x1xf32> to vector<56x128xf32>
    %42 = arith.addf %39, %41 : vector<56x128xf32>
    %c0_18 = arith.constant 0 : index
    %c0_19 = arith.constant 0 : index
    %43 = vector.load %arg1[%c0_18, %c0_19] : memref<40x128xf32, #tpu.memory_space<vmem>>, vector<16x128xf32>
    %c16 = arith.constant 16 : index
    %c0_20 = arith.constant 0 : index
    %44 = vector.load %arg1[%c16, %c0_20] : memref<40x128xf32, #tpu.memory_space<vmem>>, vector<8x128xf32>
    %c24 = arith.constant 24 : index
    %c0_21 = arith.constant 0 : index
    %45 = vector.load %arg1[%c24, %c0_21] : memref<40x128xf32, #tpu.memory_space<vmem>>, vector<8x128xf32>
    %c32 = arith.constant 32 : index
    %c0_22 = arith.constant 0 : index
    %46 = vector.load %arg1[%c32, %c0_22] : memref<40x128xf32, #tpu.memory_space<vmem>>, vector<8x128xf32>
    %c0_23 = arith.constant 0 : index
    %c0_24 = arith.constant 0 : index
    %47 = vector.load %arg2[%c0_23, %c0_24] : memref<4x128xf32, #tpu.memory_space<vmem>>, vector<1x128xf32>
    %c1_25 = arith.constant 1 : index
    %c0_26 = arith.constant 0 : index
    %48 = vector.load %arg2[%c1_25, %c0_26] : memref<4x128xf32, #tpu.memory_space<vmem>>, vector<1x128xf32>
    %c2_27 = arith.constant 2 : index
    %c0_28 = arith.constant 0 : index
    %49 = vector.load %arg2[%c2_27, %c0_28] : memref<4x128xf32, #tpu.memory_space<vmem>>, vector<1x128xf32>
    %c3 = arith.constant 3 : index
    %c0_29 = arith.constant 0 : index
    %50 = vector.load %arg2[%c3, %c0_29] : memref<4x128xf32, #tpu.memory_space<vmem>>, vector<1x128xf32>
    %51 = vector.extract_strided_slice %42 {offsets = [0, 0], sizes = [16, 128], strides = [1, 1]} : vector<56x128xf32> to vector<16x128xf32>
    %52 = vector.extract_strided_slice %42 {offsets = [16, 0], sizes = [16, 128], strides = [1, 1]} : vector<56x128xf32> to vector<16x128xf32>
    %53 = vector.extract_strided_slice %42 {offsets = [32, 0], sizes = [8, 128], strides = [1, 1]} : vector<56x128xf32> to vector<8x128xf32>
    %54 = vector.extract_strided_slice %42 {offsets = [40, 0], sizes = [8, 128], strides = [1, 1]} : vector<56x128xf32> to vector<8x128xf32>
    %55 = vector.extract_strided_slice %42 {offsets = [48, 0], sizes = [8, 128], strides = [1, 1]} : vector<56x128xf32> to vector<8x128xf32>
    %56 = vector.broadcast %47 : vector<1x128xf32> to vector<16x128xf32>
    %57 = arith.mulf %43, %56 : vector<16x128xf32>
    %58 = arith.mulf %57, %51 : vector<16x128xf32>
    %59 = vector.broadcast %48 : vector<1x128xf32> to vector<8x128xf32>
    %60 = arith.mulf %44, %59 : vector<8x128xf32>
    %61 = vector.broadcast %49 : vector<1x128xf32> to vector<8x128xf32>
    %62 = arith.mulf %45, %61 : vector<8x128xf32>
    %63 = arith.addf %60, %62 : vector<8x128xf32>
    %64 = vector.broadcast %50 : vector<1x128xf32> to vector<8x128xf32>
    %65 = arith.mulf %46, %64 : vector<8x128xf32>
    %66 = arith.addf %63, %65 : vector<8x128xf32>
    %cst_30 = arith.constant 0.577350259 : f32
    %67 = vector.broadcast %cst_30 : f32 to vector<8x128xf32>
    %68 = arith.mulf %66, %67 : vector<8x128xf32>
    %69 = arith.mulf %68, %54 : vector<8x128xf32>
    %70 = vector.broadcast %48 : vector<1x128xf32> to vector<16x128xf32>
    %71 = arith.mulf %43, %70 : vector<16x128xf32>
    %72 = arith.mulf %71, %52 : vector<16x128xf32>
    %73 = vector.broadcast %49 : vector<1x128xf32> to vector<16x128xf32>
    %74 = arith.mulf %43, %73 : vector<16x128xf32>
    %75 = arith.mulf %74, %52 : vector<16x128xf32>
    %76 = vector.broadcast %50 : vector<1x128xf32> to vector<16x128xf32>
    %77 = arith.mulf %43, %76 : vector<16x128xf32>
    %78 = arith.mulf %77, %52 : vector<16x128xf32>
    %79 = vector.broadcast %47 : vector<1x128xf32> to vector<8x128xf32>
    %80 = arith.mulf %44, %79 : vector<8x128xf32>
    %81 = arith.mulf %80, %53 : vector<8x128xf32>
    %82 = vector.broadcast %47 : vector<1x128xf32> to vector<8x128xf32>
    %83 = arith.mulf %45, %82 : vector<8x128xf32>
    %84 = arith.mulf %83, %53 : vector<8x128xf32>
    %85 = vector.broadcast %47 : vector<1x128xf32> to vector<8x128xf32>
    %86 = arith.mulf %46, %85 : vector<8x128xf32>
    %87 = arith.mulf %86, %53 : vector<8x128xf32>
    %88 = vector.broadcast %50 : vector<1x128xf32> to vector<8x128xf32>
    %89 = arith.mulf %45, %88 : vector<8x128xf32>
    %90 = vector.broadcast %49 : vector<1x128xf32> to vector<8x128xf32>
    %91 = arith.mulf %46, %90 : vector<8x128xf32>
    %92 = arith.subf %89, %91 : vector<8x128xf32>
    %93 = vector.broadcast %48 : vector<1x128xf32> to vector<8x128xf32>
    %94 = arith.mulf %46, %93 : vector<8x128xf32>
    %95 = vector.broadcast %50 : vector<1x128xf32> to vector<8x128xf32>
    %96 = arith.mulf %44, %95 : vector<8x128xf32>
    %97 = arith.subf %94, %96 : vector<8x128xf32>
    %98 = vector.broadcast %49 : vector<1x128xf32> to vector<8x128xf32>
    %99 = arith.mulf %44, %98 : vector<8x128xf32>
    %100 = vector.broadcast %48 : vector<1x128xf32> to vector<8x128xf32>
    %101 = arith.mulf %45, %100 : vector<8x128xf32>
    %102 = arith.subf %99, %101 : vector<8x128xf32>
    %cst_31 = arith.constant 0.707106769 : f32
    %103 = vector.broadcast %cst_31 : f32 to vector<8x128xf32>
    %104 = arith.mulf %92, %103 : vector<8x128xf32>
    %105 = arith.mulf %104, %55 : vector<8x128xf32>
    %cst_32 = arith.constant 0.707106769 : f32
    %106 = vector.broadcast %cst_32 : f32 to vector<8x128xf32>
    %107 = arith.mulf %97, %106 : vector<8x128xf32>
    %108 = arith.mulf %107, %55 : vector<8x128xf32>
    %cst_33 = arith.constant 0.707106769 : f32
    %109 = vector.broadcast %cst_33 : f32 to vector<8x128xf32>
    %110 = arith.mulf %102, %109 : vector<8x128xf32>
    %111 = arith.mulf %110, %55 : vector<8x128xf32>
    %c0_34 = arith.constant 0 : index
    %c0_35 = arith.constant 0 : index
    %112 = vector.load %arg8[%c0_34, %c0_35] : memref<16x25xf32, #tpu.memory_space<vmem>>, vector<16x25xf32>
    %113 = vector.extract_strided_slice %112 {offsets = [0, 0], sizes = [16, 16], strides = [1, 1]} : vector<16x25xf32> to vector<16x16xf32>
    %cst_36 = arith.constant dense<0.000000e+00> : vector<16x128xf32>
    %114 = tpu.matmul %113, %58, %cst_36 {dimension_numbers = #tpu.dot_dimension_numbers<[1], [0], [0], [1], [0, 0, 1, 1], [], []>} : vector<16x16xf32>, vector<16x128xf32>, vector<16x128xf32> -> vector<16x128xf32>
    %115 = vector.extract_strided_slice %112 {offsets = [0, 16], sizes = [16, 8], strides = [1, 1]} : vector<16x25xf32> to vector<16x8xf32>
    %cst_37 = arith.constant dense<0.000000e+00> : vector<16x128xf32>
    %116 = tpu.matmul %115, %69, %cst_37 {dimension_numbers = #tpu.dot_dimension_numbers<[1], [0], [0], [1], [0, 0, 1, 1], [], []>} : vector<16x8xf32>, vector<8x128xf32>, vector<16x128xf32> -> vector<16x128xf32>
    %117 = arith.addf %114, %116 : vector<16x128xf32>
    %118 = vector.extract_strided_slice %112 {offsets = [0, 24], sizes = [16, 1], strides = [1, 1]} : vector<16x25xf32> to vector<16x1xf32>
    %119 = vector.broadcast %118 : vector<16x1xf32> to vector<16x128xf32>
    %120 = arith.addf %117, %119 : vector<16x128xf32>
    %c0_38 = arith.constant 0 : index
    %c0_39 = arith.constant 0 : index
    %121 = vector.load %arg10[%c0_38, %c0_39] : memref<40x128xf32, #tpu.memory_space<vmem>>, vector<16x128xf32>
    tpu.vector_store %arg10[%c0_38, %c0_39], %120 {strides = array<i32>} : memref<40x128xf32, #tpu.memory_space<vmem>>, vector<16x128xf32>,
    %c0_40 = arith.constant 0 : index
    %c0_41 = arith.constant 0 : index
    %122 = vector.load %arg9[%c0_40, %c0_41] : memref<8x32xf32, #tpu.memory_space<vmem>>, vector<8x32xf32>
    %123 = vector.extract_strided_slice %122 {offsets = [0, 0], sizes = [8, 16], strides = [1, 1]} : vector<8x32xf32> to vector<8x16xf32>
    %cst_42 = arith.constant dense<0.000000e+00> : vector<8x128xf32>
    %124 = tpu.matmul %123, %72, %cst_42 {dimension_numbers = #tpu.dot_dimension_numbers<[1], [0], [0], [1], [0, 0, 1, 1], [], []>} : vector<8x16xf32>, vector<16x128xf32>, vector<8x128xf32> -> vector<8x128xf32>
    %125 = vector.extract_strided_slice %122 {offsets = [0, 16], sizes = [8, 8], strides = [1, 1]} : vector<8x32xf32> to vector<8x8xf32>
    %cst_43 = arith.constant dense<0.000000e+00> : vector<8x128xf32>
    %126 = tpu.matmul %125, %81, %cst_43 {dimension_numbers = #tpu.dot_dimension_numbers<[1], [0], [0], [1], [0, 0, 1, 1], [], []>} : vector<8x8xf32>, vector<8x128xf32>, vector<8x128xf32> -> vector<8x128xf32>
    %127 = arith.addf %124, %126 : vector<8x128xf32>
    %128 = vector.extract_strided_slice %122 {offsets = [0, 24], sizes = [8, 8], strides = [1, 1]} : vector<8x32xf32> to vector<8x8xf32>
    %cst_44 = arith.constant dense<0.000000e+00> : vector<8x128xf32>
    %129 = tpu.matmul %128, %105, %cst_44 {dimension_numbers = #tpu.dot_dimension_numbers<[1], [0], [0], [1], [0, 0, 1, 1], [], []>} : vector<8x8xf32>, vector<8x128xf32>, vector<8x128xf32> -> vector<8x128xf32>
    %130 = arith.addf %127, %129 : vector<8x128xf32>
    %c16_45 = arith.constant 16 : index
    %c0_46 = arith.constant 0 : index
    %131 = vector.load %arg10[%c16_45, %c0_46] : memref<40x128xf32, #tpu.memory_space<vmem>>, vector<8x128xf32>
    tpu.vector_store %arg10[%c16_45, %c0_46], %130 {strides = array<i32>} : memref<40x128xf32, #tpu.memory_space<vmem>>, vector<8x128xf32>,
    %132 = vector.extract_strided_slice %122 {offsets = [0, 0], sizes = [8, 16], strides = [1, 1]} : vector<8x32xf32> to vector<8x16xf32>
    %cst_47 = arith.constant dense<0.000000e+00> : vector<8x128xf32>
    %133 = tpu.matmul %132, %75, %cst_47 {dimension_numbers = #tpu.dot_dimension_numbers<[1], [0], [0], [1], [0, 0, 1, 1], [], []>} : vector<8x16xf32>, vector<16x128xf32>, vector<8x128xf32> -> vector<8x128xf32>
    %134 = vector.extract_strided_slice %122 {offsets = [0, 16], sizes = [8, 8], strides = [1, 1]} : vector<8x32xf32> to vector<8x8xf32>
    %cst_48 = arith.constant dense<0.000000e+00> : vector<8x128xf32>
    %135 = tpu.matmul %134, %84, %cst_48 {dimension_numbers = #tpu.dot_dimension_numbers<[1], [0], [0], [1], [0, 0, 1, 1], [], []>} : vector<8x8xf32>, vector<8x128xf32>, vector<8x128xf32> -> vector<8x128xf32>
    %136 = arith.addf %133, %135 : vector<8x128xf32>
    %137 = vector.extract_strided_slice %122 {offsets = [0, 24], sizes = [8, 8], strides = [1, 1]} : vector<8x32xf32> to vector<8x8xf32>
    %cst_49 = arith.constant dense<0.000000e+00> : vector<8x128xf32>
    %138 = tpu.matmul %137, %108, %cst_49 {dimension_numbers = #tpu.dot_dimension_numbers<[1], [0], [0], [1], [0, 0, 1, 1], [], []>} : vector<8x8xf32>, vector<8x128xf32>, vector<8x128xf32> -> vector<8x128xf32>
    %139 = arith.addf %136, %138 : vector<8x128xf32>
    %c24_50 = arith.constant 24 : index
    %c0_51 = arith.constant 0 : index
    %140 = vector.load %arg10[%c24_50, %c0_51] : memref<40x128xf32, #tpu.memory_space<vmem>>, vector<8x128xf32>
    tpu.vector_store %arg10[%c24_50, %c0_51], %139 {strides = array<i32>} : memref<40x128xf32, #tpu.memory_space<vmem>>, vector<8x128xf32>,
    %141 = vector.extract_strided_slice %122 {offsets = [0, 0], sizes = [8, 16], strides = [1, 1]} : vector<8x32xf32> to vector<8x16xf32>
    %cst_52 = arith.constant dense<0.000000e+00> : vector<8x128xf32>
    %142 = tpu.matmul %141, %78, %cst_52 {dimension_numbers = #tpu.dot_dimension_numbers<[1], [0], [0], [1], [0, 0, 1, 1], [], []>} : vector<8x16xf32>, vector<16x128xf32>, vector<8x128xf32> -> vector<8x128xf32>
    %143 = vector.extract_strided_slice %122 {offsets = [0, 16], sizes = [8, 8], strides = [1, 1]} : vector<8x32xf32> to vector<8x8xf32>
    %cst_53 = arith.constant dense<0.000000e+00> : vector<8x128xf32>
    %144 = tpu.matmul %143, %87, %cst_53 {dimension_numbers = #tpu.dot_dimension_numbers<[1], [0], [0], [1], [0, 0, 1, 1], [], []>} : vector<8x8xf32>, vector<8x128xf32>, vector<8x128xf32> -> vector<8x128xf32>
    %145 = arith.addf %142, %144 : vector<8x128xf32>
    %146 = vector.extract_strided_slice %122 {offsets = [0, 24], sizes = [8, 8], strides = [1, 1]} : vector<8x32xf32> to vector<8x8xf32>
    %cst_54 = arith.constant dense<0.000000e+00> : vector<8x128xf32>
    %147 = tpu.matmul %146, %111, %cst_54 {dimension_numbers = #tpu.dot_dimension_numbers<[1], [0], [0], [1], [0, 0, 1, 1], [], []>} : vector<8x8xf32>, vector<8x128xf32>, vector<8x128xf32> -> vector<8x128xf32>
    %148 = arith.addf %145, %147 : vector<8x128xf32>
    %c32_55 = arith.constant 32 : index
    %c0_56 = arith.constant 0 : index
    %149 = vector.load %arg10[%c32_55, %c0_56] : memref<40x128xf32, #tpu.memory_space<vmem>>, vector<8x128xf32>
    tpu.vector_store %arg10[%c32_55, %c0_56], %148 {strides = array<i32>} : memref<40x128xf32, #tpu.memory_space<vmem>>, vector<8x128xf32>,
    return
  }
  func.func @transform_0(%arg0: i32) -> (i32, i32) {
    %c0_i32 = arith.constant 0 : i32
    %c0_i32_0 = arith.constant 0 : i32
    return %c0_i32, %arg0 : i32, i32
  }
  func.func @transform_1(%arg0: i32) -> (i32, i32) {
    %c0_i32 = arith.constant 0 : i32
    %c0_i32_0 = arith.constant 0 : i32
    return %c0_i32, %arg0 : i32, i32
  }
  func.func @transform_2(%arg0: i32) -> (i32, i32) {
    %c0_i32 = arith.constant 0 : i32
    %c0_i32_0 = arith.constant 0 : i32
    return %c0_i32, %arg0 : i32, i32
  }
  func.func @transform_3(%arg0: i32) -> (i32, i32) {
    %c0_i32 = arith.constant 0 : i32
    %c0_i32_0 = arith.constant 0 : i32
    %c0_i32_1 = arith.constant 0 : i32
    return %c0_i32, %c0_i32_0 : i32, i32
  }
  func.func @transform_4(%arg0: i32) -> (i32, i32) {
    %c0_i32 = arith.constant 0 : i32
    %c0_i32_0 = arith.constant 0 : i32
    %c0_i32_1 = arith.constant 0 : i32
    return %c0_i32, %c0_i32_0 : i32, i32
  }
  func.func @transform_5(%arg0: i32) -> (i32, i32) {
    %c0_i32 = arith.constant 0 : i32
    %c0_i32_0 = arith.constant 0 : i32
    %c0_i32_1 = arith.constant 0 : i32
    return %c0_i32, %c0_i32_0 : i32, i32
  }
  func.func @transform_6(%arg0: i32) -> (i32, i32) {
    %c0_i32 = arith.constant 0 : i32
    %c0_i32_0 = arith.constant 0 : i32
    %c0_i32_1 = arith.constant 0 : i32
    return %c0_i32, %c0_i32_0 : i32, i32
  }
  func.func @transform_7(%arg0: i32) -> (i32, i32) {
    %c0_i32 = arith.constant 0 : i32
    %c0_i32_0 = arith.constant 0 : i32
    %c0_i32_1 = arith.constant 0 : i32
    return %c0_i32, %c0_i32_0 : i32, i32
  }
  func.func @transform_8(%arg0: i32) -> (i32, i32) {
    %c0_i32 = arith.constant 0 : i32
    %c0_i32_0 = arith.constant 0 : i32
    %c0_i32_1 = arith.constant 0 : i32
    return %c0_i32, %c0_i32_0 : i32, i32
  }
  func.func @transform_9(%arg0: i32) -> (i32, i32) {
    %c0_i32 = arith.constant 0 : i32
    %c0_i32_0 = arith.constant 0 : i32
    return %c0_i32, %arg0 : i32, i32
  }
}

</mosaic_0001>

<bundles_post_ra>
// kernel: tpu_custom_call.1
= control target key start
LH: loop header
LB: loop body
LE: loop exit
PB: predicated region body
PF: predicated region fallthrough
CT: control target
= control target key end

     0   :  { %14 = vsyncpa [#allocation4], 0  ;;  %s1586_s0 = inlined_call_operand.vmem [shape: f32[40,256], index: 0, kind: input, shape index: {}]   ;;  %s1587_s1 = inlined_call_operand.vmem [shape: f32[4,256], index: 1, kind: input, shape index: {}]   ;;  %s1588_s2 = inlined_call_operand.vmem [shape: f32[8,256], index: 2, kind: input, shape index: {}]   ;;  %s1589_s3 = inlined_call_operand.vmem [shape: f32[16,8], index: 3, kind: input, shape index: {}]   ;;  %s1590_s4 = inlined_call_operand.vmem [shape: f32[16,3], index: 4, kind: input, shape index: {}]   ;;  %s1591_s5 = inlined_call_operand.vmem [shape: f32[56,16], index: 5, kind: input, shape index: {}]   ;;  %s1592_s6 = inlined_call_operand.vmem [shape: f32[56,1], index: 6, kind: input, shape index: {}]   ;;  %s1593_s7 = inlined_call_operand.vmem [shape: f32[16,25], index: 7, kind: input, shape index: {}]   ;;  %s1594_s8 = inlined_call_operand.vmem [shape: f32[8,32], index: 8, kind: input, shape index: {}]   ;;  %s1595_s9 = inlined_call_operand.hbm [shape: f32[40,256], index: 9, kind: output, shape index: {}]  }
   0x1   :  { %16 = vsyncpa [#allocation4 + $0x1], 0  ;;  %s1340_s30 = smov 0   ;;  %s1342_s10 = smov 0  }
   0x2   :  { %s1344_s11 = smov 0   ;;  %s1346_s12 = smov 0  }
   0x3 LB: > { %s1361_s13 = sadd.s32 4294967295, %s1278_s12   ;;  %s1106_s14 = sadd.s32 4294967294, %s1278_s12   ;;  %s1278_s12 = sphi %s1346_s12, %s1601_s12   ;;  %s1274_s11 = sphi %s1344_s11, %s1600_s11   ;;  %s1270_s10 = sphi %s1342_s10, %s1599_s10   ;;  %s1266_s30 = sphi %s1340_s30, %s1598_s30  }
   0x4   : > { %s1365_s15 = sadd.s32 1, %s1278_s12   ;;  %s29_s16 = sadd.s32 1, %s1274_s11 }
   0x5   : > { %s26_s17 = ssub.s32 %s1278_s12, %s1365_s15  ;;  %p36_p0 = scmp.ne.s32.totalorder %s1274_s11, %s1270_s10 }
   0x6   : > { %p27_p1 = scmp.eq.s32.totalorder %s26_s17, 0  ;;  %p37_p2 = scmp.eq.s32.totalorder %s1278_s12, 0 }
   0x7   : > { %p244_p3 = scmp.eq.s32.totalorder %s1361_s13, 1  ;;  %p249_p4 = scmp.ne.s32.totalorder %s1270_s10, %s1266_s30 }
   0x8   : > { %s1377_s18 = scalar_select %p27_p1, %s1274_s11, %s29_s16  }
   0x9   : > { %p38_p5 = por %p37_p2, %p36_p0  ;;  %p1379_p6 = por %p244_p3, %p36_p0 }
   0xa   : > { %p250_p7 = scmp.eq.s32.totalorder %s1106_s14, 1  ;;  %p1108_p9 = scmp.ge.s32.totalorder %s1278_s12, 2 }
   0xc   : > { %p1383_p8 = por %p250_p7, %p249_p4  ;;  %284 = sbr.rel (%p1108_p9) target bundleno = 26 (0x1a), region = 40 }
  0x11   : > { %287 = sbr.rel (!%p38_p5) target bundleno = 26 (0x1a), region = 44  ;;  %s289_s21 = sand.u32 (%p38_p5), 1, %s1274_s11  }
  0x12   : > { %s1109_s22 = sshll.u32 (%p38_p5), %s1278_s12, 3  ;;  %s1142_s23 = smul.u32 (%p38_p5), 40, %s289_s21 }
  0x13   : > { %s293_s26 = scalar_lea.vmem (%p38_p5), %s1586_s0, %s1109_s22 }
  0x14   : > { %v330_v0 = vld [vmem:[%s293_s26] sm:$0xff] (%p38_p5)  ;;  %v332_v1 = vld [vmem:[%s293_s26 + $0x10] sm:$0xff] (%p38_p5)  ;;  %s291_s27 = scalar_lea.vmem (%p38_p5), [#allocation2], %s1142_s23 }
  0x15   : > { %v334_v2 = vld [vmem:[%s293_s26 + $0x20] sm:$0xff] (%p38_p5)  ;;  %331 = vst [vmem:[%s291_s27] sm:$0xff] (%p38_p5), %v330_v0  ;;  %v336_v3 = vld [vmem:[%s293_s26 + $0x30] sm:$0xff] (%p38_p5) }
  0x16   : > { %333 = vst [vmem:[%s291_s27 + $0x8] sm:$0xff] %v332_v1  ;;  %v338_v4 = vld [vmem:[%s293_s26 + $0x40] sm:$0xff] }
  0x17   : > { %335 = vst [vmem:[%s291_s27 + $0x10] sm:$0xff] %v334_v2 }
  0x18   : > { %337 = vst [vmem:[%s291_s27 + $0x18] sm:$0xff] %v336_v3 }
  0x19   : > { %339 = vst [vmem:[%s291_s27 + $0x20] sm:$0xff] %v338_v4 }
  0x1a PF: > { %p1110_p10 = scmp.ge.s32.totalorder %s1278_s12, 1  ;;  %p358_p11 = scmp.lt.s32.totalorder %s1278_s12, 3 }
  0x1c   : > { %p359_p12 = pnand %p1110_p10, %p358_p11 }
  0x1d   : > { %p408_p13 = scmp.lt.s32.totalorder (!%p359_p12), %s1361_s13, 1  ;;  %s1283_s26 = smov (!%p359_p12), 112  }
  0x1e   : > { %362 = sbr.rel (%p359_p12) target bundleno = 608 (0x260), region = 90  ;;  %s365_s27 = sand.u32 (!%p359_p12), 1, %s1270_s10  }
  0x1f   : > { %s1137_s16 = sshll.u32 (!%p359_p12), %s1361_s13, 3 }
  0x20   : > { %s1010_s17 = scalar_lea.hbm (!%p359_p12), %s1595_s9, %s1137_s16  ;;  %s1236_s16 = scalar_lea.hbm (!%p359_p12), %s1595_s9, 80 }
  0x21   : > { %s1013_s23 = sshll.u32 (!%p359_p12), %s1010_s17, 4  ;;  %s1014_s23 = int_to_ptr.hbm [resolvable:$true] %s1013_s23 }
  0x23   : > { %v419_v5 = vld [vmem:[%s1590_s4] sm:$0xff]  ;;  %v1280_v6 = vmov 0   ;;  %s409_s14 = scalar_select %p408_p13, %s1361_s13, 1  ;;  %v420_v7 = vld [vmem:[%s1590_s4 + $0x8] sm:$0xff]  ;;  %v1281_v8 = vmov 1   ;;  %v1282_v9 = vmov 2  }
  0x24   : > { %1193 = vset.pattern.permute.xlu0 %v1280_v6  ;;  %1194 = vset.pattern.permute.xlu1 %v1281_v8  ;;  %v417_v10 = vld [vmem:[%s1589_s3] sm:$0xff]  ;;  %vm431_vm0 = vcmask 64512   ;;  %v418_v12 = vld [vmem:[%s1589_s3 + $0x8] sm:$0xff]  ;;  %v570_v15 = vld [vmem:[%s1592_s6 + $0x10] sm:$0xff]  ;;  %v1284_v16 = vmov 16.0   ;;  %vm610_vm13 = vcmask 130048  }
  0x25   : > { %423 = vperm.xlu0 %1193, %v419_v5   ;;  %1195 = vset.pattern.permute.xlu2 %v1282_v9  ;;  %s1111_s21 = sshll.u32 %s409_s14, 2  ;;  %s1112_s22 = sshll.u32 %s409_s14, 3  ;;  %v569_v13 = vld [vmem:[%s1592_s6 + $0x8] sm:$0xff]  ;;  %v1427_v14 = vld [vmem:[%s1593_s7] sm:$0xff]  ;;  %1204 = vrcp.f32 %v1284_v16 }
  0x26   : > { %506 = vperm.xlu1 %1194, %v420_v7   ;;  %516 = vperm.xlu2 %1195, %v420_v7   ;;  %s1408_s25 = scalar_lea.vmem %s1587_s1, %s1111_s21  ;;  %s415_s28 = scalar_lea.vmem %s1588_s2, %s1112_s22 }
  0x27   : > { %v416_v11 = vld [vmem:[%s415_s28] sm:$0xff]  ;;  %s1285_s22 = smov 104   ;;  %s1495_s28 = smul.u32 40, %s365_s27 }
  0x28   : > { %453 = vmatpush.msra.mxu0 %v416_v11  ;;  %s1230_s13 = sshra.s32 %s1014_s23, 4  ;;  %s1231_s13 = int_to_ptr.hbm [resolvable:$true] %s1230_s13 }
  0x29   : > { %1113 = vmatmul.msk.f32.vlgmr.msra.gmra.mxu0 %vm431_vm0, %v417_v10  ;;  %v573_v10 = vld [vmem:[%s1592_s6 + $0x28] sm:$0xff]  ;;  %s1499_s29 = scalar_lea.vmem [#allocation2], %s1495_s28  ;;  %s1232_s24 = scalar_lea.hbm %s1231_s13, 40 }
  0x2a   : > { %p1233_p0 = scmp.ne.s32.totalorder %s1231_s13, %s1232_s24  ;;  %p1237_p3 = scmp.lt.s32.totalorder %s1231_s13, %s1595_s9 }
  0x2b   : > { %v1205_v19 = vpop.eup %1204  ;;  %p1238_p4 = scmp.lt.s32.totalorder %s1236_s16, %s1232_s24 }
  0x2c   : > { %v469_v20 = vmul.f32 16.0, %v1205_v19  ;;  %vm473_vm1 = vweird.f32 %v1205_v19  ;;  %p1234_p1 = pnand %p1233_p0, %p1379_p6 }
  0x2d   : > { %428 = vperm.xlu0 %1193, %v420_v7   ;;  %p1239_p5 = por %p1238_p4, %p1237_p3 }
  0x2e   : > { %502 = vperm.xlu1 %1194, %v419_v5   ;;  %512 = vperm.xlu2 %1195, %v419_v5   ;;  %v470_v25 = vsub.f32 1.0, %v469_v20  ;;  %p1235_p2 = pneg %p1234_p1 }
  0x30   : > { %v471_v28 = vmul.f32 %v1205_v19, %v470_v25  ;;  %p1240_p7 = pnand %p1239_p5, %p1235_p2 }
  0x31   : > { %1114 = vmatmul.msk.f32.gmra.mxu0 %vm431_vm0, %v418_v12 }
  0x32   : > { %v472_v31 = vadd.f32 %v1205_v19, %v471_v28 }
  0x34   : > { %v474_v34 = vsel %vm473_vm1, %v1205_v19, %v472_v31 }
  0x35   : > { %582 = vperm.xlu0 %1193, %v569_v13  }
  0x36   : > { %1196 = vset.pattern.permute.xlu1 %v1280_v6  ;;  %1197 = vset.pattern.permute.xlu2 %v1280_v6 }
  0x37   : > { %602 = vperm.xlu1 %1196, %v573_v10  }
  0x3d   : > { %731 = vrot.lane.b32.xlu0 %v1427_v14, %s1283_s26 }
  0x45   : > { %587 = vperm.xlu0 %1193, %v570_v15  }
  0x80   : > { %v517_v55 = vpop.permute.xlu2 %516 }
  0x88   : > { %v513_v0 = vpop.permute.xlu2 %512 }
  0x97   : > { %v424_v17 = vpop.permute.xlu0 %423 }
  0x98   : > { %v507_v52 = vpop.permute.xlu1 %506 }
  0x9f   : > { %v429_v21 = vpop.permute.xlu0 %428 }
  0xa0   : > { %v503_v61 = vpop.permute.xlu1 %502 }
  0xa6   : > { %v455_v18 = vpop.f32.mrf.mxu0 }
  0xa7   : > { %v456_v23 = vadd.f32 %v455_v18, %v424_v17 }
  0xae   : > { %v458_v22 = vpop.f32.mrf.mxu0 }
  0xaf   : > { %v459_v24 = vadd.f32 %v458_v22, %v429_v21 }
  0xb1   : > { %v461_v26 = vadd.f32 %v459_v24, %v456_v23 }
  0xb3   : > { %v462_v27 = vrot.slane %v461_v26, 4 }
  0xb5   : > { %v463_v29 = vadd.f32 %v462_v27, %v461_v26  ;;  %v1440_v26 = vld [vmem:[%s1593_s7 + $0x8] sm:$0xff] }
  0xb6   : > { %733 = vrot.lane.b32.xlu1 %v1440_v26, %s1283_s26 }
  0xb7   : > { %v464_v30 = vrot.slane %v463_v29, 2 }
  0xb9   : > { %v465_v32 = vadd.f32 %v464_v30, %v463_v29 }
  0xbb   : > { %v466_v33 = vrot.slane %v465_v32, 1 }
  0xbd   : > { %v467_v35 = vadd.f32 %v466_v33, %v465_v32 }
  0xbf   : > { %v475_v36 = vmul.f32 %v474_v34, %v467_v35  ;;  %v561_v35 = vld [vmem:[%s1591_s5] sm:$0xff] }
  0xc1   : > { %v476_v37 = vsub.f32 %v456_v23, %v475_v36  ;;  %v477_v38 = vsub.f32 %v459_v24, %v475_v36  ;;  %v574_v36 = vld [vmem:[%s1592_s6 + $0x30] sm:$0xff] }
  0xc2   : > { %607 = vperm.xlu1 %1196, %v574_v36  }
  0xc3   : > { %v478_v39 = vmul.f32 %v476_v37, %v476_v37  ;;  %v479_v40 = vmul.f32 %v477_v38, %v477_v38 }
  0xc5   : > { %v480_v41 = vadd.f32 %v479_v40, %v478_v39  ;;  %v568_v39 = vld [vmem:[%s1592_s6] sm:$0xff]  ;;  %v564_v40 = vld [vmem:[%s1591_s5 + $0x18] sm:$0xff] }
  0xc6   : > { %577 = vperm.xlu2 %1197, %v568_v39  }
  0xc7   : > { %v481_v42 = vrot.slane %v480_v41, 4 }
  0xc9   : > { %v482_v43 = vadd.f32 %v481_v42, %v480_v41  ;;  %v571_v41 = vld [vmem:[%s1592_s6 + $0x18] sm:$0xff]  ;;  %v565_v42 = vld [vmem:[%s1591_s5 + $0x20] sm:$0xff] }
  0xcb   : > { %v483_v44 = vrot.slane %v482_v43, 2 }
  0xcd   : > { %v484_v45 = vadd.f32 %v483_v44, %v482_v43  ;;  %v572_v43 = vld [vmem:[%s1592_s6 + $0x20] sm:$0xff]  ;;  %v566_v44 = vld [vmem:[%s1591_s5 + $0x28] sm:$0xff] }
  0xce   : > { %592 = vperm.xlu2 %1197, %v571_v41  }
  0xcf   : > { %v485_v46 = vrot.slane %v484_v45, 1 }
  0xd1   : > { %v486_v47 = vadd.f32 %v485_v46, %v484_v45  ;;  %v567_v45 = vld [vmem:[%s1591_s5 + $0x30] sm:$0xff]  ;;  %v1200_v46 = vld [vmem:[%s1408_s25] ss:$0 sm:$0xff] }
  0xd3   : > { %v487_v48 = vmul.f32 %v486_v47, %v474_v34  ;;  %v562_v34 = vld [vmem:[%s1591_s5 + $0x8] sm:$0xff] }
  0xd4   : > { %v1502_v47 = vld [vmem:[%s1499_s29 + $0x8] sm:$0xff] }
  0xd5   : > { %v488_v49 = vadd.f32 1e-05, %v487_v48  ;;  %v603_v48 = vpop.permute.xlu1 %602 }
  0xd6   : > { %597 = vperm.xlu2 %1197, %v572_v43  }
  0xd7   : > { %1206 = vrsqrt.f32 %v488_v49  ;;  %vm495_vm3 = vweird.f32 %v488_v49 }
  0xdd   : > { %v1207_v50 = vpop.eup %1206 }
  0xde   : > { %v490_v51 = vmul.f32 %v1207_v50, %v488_v49  ;;  %vm496_vm2 = vweird.f32 %v1207_v50  ;;  %v1505_v49 = vld [vmem:[%s1499_s29] sm:$0xff] }
  0xdf   : > { %vm497_vm4 = vmor %vm495_vm3, %vm496_vm2 }
  0xe0   : > { %v491_v53 = vmul.f32 %v1207_v50, %v490_v51  ;;  %v681_v51 = vmul.f32 %v1200_v46, %v1502_v47 }
  0xe2   : > { %v492_v54 = vmul.f32 0.5, %v491_v53  ;;  %v680_v53 = vmul.f32 %v1200_v46, %v1505_v49 }
  0xe4   : > { %v493_v56 = vsub.f32 1.5, %v492_v54 }
  0xe6   : > { %v494_v57 = vmul.f32 %v1207_v50, %v493_v56 }
  0xe8   : > { %v498_v58 = vsel %vm497_vm4, %v1207_v50, %v494_v57  ;;  %v583_v50 = vpop.permute.xlu0 %582 }
  0xe9   : > { %v500_v59 = vmul.f32 %v498_v58, %v477_v38  ;;  %v499_v60 = vmul.f32 %v498_v58, %v476_v37  ;;  %v563_v37 = vld [vmem:[%s1591_s5 + $0x10] sm:$0xff]  ;;  %v1462_v38 = vld [vmem:[%s1594_s8] sm:$0xff] }
  0xea   : > { %803 = vrot.lane.b32.xlu1 %v1462_v38, %s1283_s26  ;;  %849 = vrot.lane.b32.xlu0 %v1462_v38, %s1285_s22  ;;  %s1000_s22 = scalar_lea.sflag [#allocation4], %s365_s27 }
  0xeb   : > { %v510_v62 = vmul.f32 %v507_v52, %v500_v59  ;;  %v509_v63 = vmul.f32 %v503_v61, %v499_v60 }
  0xed   : > { %v520_v1 = vadd.f32 %v517_v55, %v510_v62  ;;  %v519_v2 = vadd.f32 %v513_v0, %v509_v63  ;;  %v1201_v0 = vld [vmem:[%s1408_s25 + $0x1] ss:$0 sm:$0xff] }
  0xee   : > { %v694_v39 = vmul.f32 %v1201_v0, %v1505_v49 }
  0xef   : > { %v1116_v3 = vmul.f32 -1.442695, %v520_v1  ;;  %v1115_v4 = vmul.f32 -1.442695, %v519_v2 }
  0xf1   : > { %1208 = vpow2.f32 %v1116_v3  ;;  %v672_v3 = vld [vmem:[%s1499_s29 + $0x10] sm:$0xff] }
  0xf2   : > { %1210 = vpow2.f32 %v1115_v4  ;;  %v673_v4 = vld [vmem:[%s1499_s29 + $0x18] sm:$0xff]  ;;  %v706_v10 = vmul.f32 %v1200_v46, %v672_v3 }
  0xf7   : > { %v1209_v5 = vpop.eup %1208 }
  0xf8   : > { %v1211_v6 = vpop.eup %1210  ;;  %v528_v7 = vadd.f32 1.0, %v1209_v5  ;;  %v685_v5 = vmul.f32 %v1201_v0, %v672_v3 }
  0xf9   : > { %v527_v8 = vadd.f32 1.0, %v1211_v6 }
  0xfa   : > { %1212 = vrcp.f32 %v528_v7  ;;  %v555_v16 = vand.u32 2147483648, %v528_v7  ;;  %v553_v19 = vand.u32 2147483647, %v528_v7  ;;  %vm549_vm7 = vweird.f32 %v528_v7 }
  0xfb   : > { %1214 = vrcp.f32 %v527_v8  ;;  %v540_v20 = vand.u32 2147483648, %v527_v8  ;;  %v538_v22 = vand.u32 2147483647, %v527_v8  ;;  %vm534_vm9 = vweird.f32 %v527_v8 }
  0xfc   : > { %v556_v24 = vor.u32 1.1754944e-38, %v555_v16  ;;  %vm554_vm10 = vcmp.eq.f32.partialorder %v553_v19, 8.507059e+37 }
  0xfd   : > { %v541_v28 = vor.u32 1.1754944e-38, %v540_v20  ;;  %vm539_vm12 = vcmp.eq.f32.partialorder %v538_v22, 8.507059e+37 }
 0x100   : > { %v1213_v9 = vpop.eup %1212 }
 0x101   : > { %v1215_v11 = vpop.eup %1214  ;;  %v545_v12 = vmul.f32 %v1213_v9, %v528_v7  ;;  %vm550_vm5 = vweird.f32 %v1213_v9  ;;  %v1520_v7 = vld [vmem:[%s1408_s25 + $0x3] ss:$0 sm:$0xff] }
 0x102   : > { %v530_v13 = vmul.f32 %v1215_v11, %v527_v8  ;;  %vm535_vm6 = vweird.f32 %v1215_v11  ;;  %vm551_vm8 = vmor %vm549_vm7, %vm550_vm5 }
 0x103   : > { %v546_v15 = vsub.f32 1.0, %v545_v12  ;;  %vm536_vm11 = vmor %vm534_vm9, %vm535_vm6 }
 0x104   : > { %v531_v17 = vsub.f32 1.0, %v530_v13 }
 0x105   : > { %v547_v18 = vmul.f32 %v1213_v9, %v546_v15  ;;  %v732_v15 = vpop.permute.xlu0 %731 }
 0x106   : > { %v532_v21 = vmul.f32 %v1215_v11, %v531_v17 }
 0x107   : > { %v548_v23 = vadd.f32 %v1213_v9, %v547_v18 }
 0x108   : > { %v533_v25 = vadd.f32 %v1215_v11, %v532_v21 }
 0x109   : > { %v552_v27 = vsel %vm551_vm8, %v1213_v9, %v548_v23  ;;  %v674_v9 = vld [vmem:[%s1499_s29 + $0x20] sm:$0xff] }
 0x10a   : > { %v557_v29 = vsel %vm554_vm10, %v556_v24, %v552_v27  ;;  %v537_v30 = vsel %vm536_vm11, %v1215_v11, %v533_v25  ;;  %v708_v11 = vmul.f32 %v1200_v46, %v673_v4  ;;  %v690_v13 = vmul.f32 %v1520_v7, %v674_v9 }
 0x10b   : > { %v560_v31 = vmul.f32 %v557_v29, %v520_v1  ;;  %v542_v32 = vsel %vm539_vm12, %v541_v28, %v537_v30  ;;  %v1202_v1 = vld [vmem:[%s1408_s25 + $0x2] ss:$0 sm:$0xff]  ;;  %v710_v18 = vmul.f32 %v1200_v46, %v674_v9  ;;  %v715_v24 = vmul.f32 %v1201_v0, %v674_v9  ;;  %s407_s25 = scalar_lea.vmem [#allocation3], %s1495_s28 }
 0x10c   : > { %v559_v33 = vmul.f32 %v542_v32, %v519_v2  ;;  %v687_v6 = vmul.f32 %v1202_v1, %v673_v4  ;;  %v716_v27 = vmul.f32 %v1520_v7, %v672_v3  ;;  %v712_v28 = vmul.f32 %v1520_v7, %v673_v4  ;;  %s1011_s21 = sshll.u32 %s407_s25, 4  ;;  %s1012_s21 = int_to_ptr.vmem [resolvable:$true] %s1011_s21 }
 0x10d   : > { %646 = vmatpush.msrb.mxu0 %v560_v31  ;;  %1140 = vmatpush.msra.mxu1 %v560_v31  ;;  %v713_v29 = vmul.f32 %v1202_v1, %v674_v9  ;;  %v1286_v30 = vmov 24   ;;  %v718_v36 = vmul.f32 %v1202_v1, %v672_v3  ;;  %v698_v46 = vmul.f32 %v1202_v1, %v1505_v49 }
 0x10e   : > { %v688_v12 = vadd.f32 %v687_v6, %v685_v5  ;;  %1199 = vset.pattern.permute.xlu0 %v1286_v30  ;;  %1198 = vset.pattern.permute.xlu2 %v1286_v30 }
 0x10f   : > { %647 = vmatpush.msrb.mxu0 %v559_v33  ;;  %1141 = vmatpush.msra.mxu1 %v559_v33  ;;  %v714_v43 = vsub.f32 %v712_v28, %v713_v29 }
 0x110   : > { %1118 = vmatmul.msk.f32.vlgmr.msra.gmra.mxu1 %vm610_vm13, %v562_v34  ;;  %1117 = vmatmul.msk.f32.vlgmr.msrb.gmra.mxu0 %vm610_vm13, %v561_v35  ;;  %v691_v21 = vadd.f32 %v690_v13, %v688_v12  ;;  %v695_v34 = vmul.f32 %v1201_v0, %v1502_v47  ;;  %v588_v35 = vpop.permute.xlu0 %587 }
 0x111   : > { %794 = vperm.xlu0 %1199, %v1440_v26   ;;  %790 = vperm.xlu2 %1198, %v1427_v14  }
 0x112   : > { %v692_v25 = vmul.f32 0.57735026, %v691_v21 }
 0x118   : > { %1119 = vmatmul.msk.f32.gmra.mxu1 %vm610_vm13, %v563_v37  ;;  %v719_v37 = vmul.f32 %v1201_v0, %v673_v4 }
 0x120   : > { %1120 = vmatmul.msk.f32.gmra.mxu1 %vm610_vm13, %v564_v40  ;;  %v578_v52 = vpop.permute.xlu2 %577 }
 0x128   : > { %1121 = vmatmul.msk.f32.gmra.mxu1 %vm610_vm13, %v565_v42  ;;  %v1509_v61 = vpop.permute.xlu1 %733  ;;  %v593_v62 = vpop.permute.xlu2 %592  ;;  %v717_v42 = vsub.f32 %v715_v24, %v716_v27 }
 0x130   : > { %1122 = vmatmul.msk.f32.gmra.mxu1 %vm610_vm13, %v566_v44  ;;  %v598_v8 = vpop.permute.xlu2 %597  ;;  %v699_v44 = vmul.f32 %v1202_v1, %v1502_v47 }
 0x134   : > { %v608_v2 = vpop.permute.xlu1 %607 }
 0x138   : > { %1123 = vmatmul.msk.f32.gmra.mxu1 %vm610_vm13, %v567_v45  ;;  %v720_v45 = vsub.f32 %v718_v36, %v719_v37 }
 0x15c   : > { %v804_v22 = vpop.permute.xlu1 %803 }
 0x16b   : > { %v791_v0 = vpop.permute.xlu2 %790 }
 0x18d   : > { %v652_v54 = vpop.f32.mrf.mxu1  ;;  %v649_v55 = vpop.f32.mrf.mxu0 }
 0x18e   : > { %v653_v56 = vadd.f32 %v652_v54, %v583_v50  ;;  %v650_v57 = vadd.f32 %v649_v55, %v578_v52  ;;  %v725_v54 = vmul.f32 0.70710677, %v720_v45 }
 0x190   : > { %v683_v58 = vmul.f32 %v681_v51, %v653_v56  ;;  %v682_v59 = vmul.f32 %v680_v53, %v650_v57  ;;  %v721_v51 = vmul.f32 0.70710677, %v714_v43  ;;  %v850_v57 = vpop.permute.xlu0 %849 }
 0x192   : > { %780 = vmatpush.msra.mxu3 %v683_v58 }
 0x194   : > { %781 = vmatpush.msra.mxu3 %v682_v59 }
 0x195   : > { %v655_v60 = vpop.f32.mrf.mxu1  ;;  %1126 = vmatmul.msk.f32.vlgmr.msra.gmra.mxu3 %vm610_vm13, %v1427_v14 }
 0x196   : > { %v656_v40 = vadd.f32 %v655_v60, %v588_v35  ;;  %v703_v60 = vmul.f32 %v1520_v7, %v1502_v47 }
 0x198   : > { %v696_v50 = vmul.f32 %v694_v39, %v656_v40  ;;  %v700_v55 = vmul.f32 %v698_v46, %v656_v40  ;;  %v795_v5 = vpop.permute.xlu0 %794 }
 0x19d   : > { %v658_v63 = vpop.f32.mrf.mxu1  ;;  %1127 = vmatmul.msk.f32.gmra.mxu3 %vm610_vm13, %v1440_v26 }
 0x19e   : > { %v659_v32 = vadd.f32 %v658_v63, %v593_v62  ;;  %v702_v62 = vmul.f32 %v1520_v7, %v1505_v49 }
 0x1a0   : > { %v697_v26 = vmul.f32 %v695_v34, %v659_v32  ;;  %v701_v14 = vmul.f32 %v699_v44, %v659_v32  ;;  %v705_v63 = vmul.f32 %v703_v60, %v659_v32 }
 0x1a5   : > { %v661_v16 = vpop.f32.mrf.mxu1 }
 0x1a6   : > { %v662_v17 = vadd.f32 %v661_v16, %v598_v8 }
 0x1a8   : > { %v707_v19 = vmul.f32 %v706_v10, %v662_v17  ;;  %v709_v20 = vmul.f32 %v708_v11, %v662_v17  ;;  %v711_v23 = vmul.f32 %v710_v18, %v662_v17 }
 0x1aa   : > { %822 = vmatpush.msra.mxu0 %v707_v19 }
 0x1ab   : > { %1128 = vmatmul.msk.f32.vlgmr.msra.gmra.mxu0 %vm431_vm0, %v804_v22 }
 0x1ac   : > { %890 = vmatpush.msrb.mxu0 %v709_v20 }
 0x1ad   : > { %v664_v31 = vpop.f32.mrf.mxu1 }
 0x1ae   : > { %952 = vmatpush.msra.mxu0 %v711_v23  ;;  %v665_v33 = vadd.f32 %v664_v31, %v603_v48  ;;  %v723_v48 = vmul.f32 0.70710677, %v717_v42 }
 0x1b0   : > { %v693_v41 = vmul.f32 %v692_v25, %v665_v33 }
 0x1b2   : > { %754 = vmatpush.msra.mxu2 %v693_v41 }
 0x1b3   : > { %1124 = vmatmul.msk.f32.vlgmr.msra.gmra.mxu2 %vm431_vm0, %v732_v15  ;;  %1131 = vmatmul.msk.f32.vlgmr.msrb.gmra.mxu0 %vm431_vm0, %v804_v22 }
 0x1b4   : > { %843 = vmatpush.msrb.mxu2 %v697_v26 }
 0x1b5   : > { %v667_v52 = vpop.f32.mrf.mxu1 }
 0x1b6   : > { %v668_v53 = vadd.f32 %v667_v52, %v608_v2  ;;  %844 = vmatpush.msrb.mxu2 %v696_v50 }
 0x1b8   : > { %909 = vmatpush.msra.mxu2 %v701_v14  ;;  %v724_v56 = vmul.f32 %v723_v48, %v668_v53  ;;  %v722_v58 = vmul.f32 %v721_v51, %v668_v53  ;;  %v726_v59 = vmul.f32 %v725_v54, %v668_v53 }
 0x1ba   : > { %910 = vmatpush.msra.mxu2 %v700_v55  ;;  %868 = vmatpush.msrb.mxu3 %v722_v58 }
 0x1bb   : > { %1125 = vmatmul.msk.f32.gmra.mxu2 %vm431_vm0, %v1509_v61  ;;  %1130 = vmatmul.msk.f32.vlgmr.msrb.gmra.mxu3 %vm431_vm0, %v850_v57  ;;  %v704_v61 = vmul.f32 %v702_v62, %v656_v40 }
 0x1bc   : > { %930 = vmatpush.msra.mxu3 %v724_v56  ;;  %1134 = vmatmul.msk.f32.vlgmr.msra.gmra.mxu0 %vm431_vm0, %v804_v22 }
 0x1be   : > { %992 = vmatpush.msrb.mxu3 %v726_v59 }
 0x1c3   : > { %1129 = vmatmul.msk.f32.vlgmr.msrb.gmra.mxu2 %vm610_vm13, %v1462_v38  ;;  %1133 = vmatmul.msk.f32.vlgmr.msra.gmra.mxu3 %vm431_vm0, %v850_v57 }
 0x1c4   : > { %971 = vmatpush.msrb.mxu2 %v705_v63 }
 0x1c6   : > { %972 = vmatpush.msrb.mxu2 %v704_v61 }
 0x1cb   : > { %1132 = vmatmul.msk.f32.vlgmr.msra.gmra.mxu2 %vm610_vm13, %v1462_v38  ;;  %1136 = vmatmul.msk.f32.vlgmr.msrb.gmra.mxu3 %vm431_vm0, %v850_v57 }
 0x1d3   : > { %1135 = vmatmul.msk.f32.vlgmr.msrb.gmra.mxu2 %vm610_vm13, %v1462_v38 }
 0x218   : > { %v783_v47 = vpop.f32.mrf.mxu3 }
 0x220   : > { %v786_v3 = vpop.f32.mrf.mxu3 }
 0x228   : > { %v824_v8 = vpop.f32.mrf.mxu0 }
 0x230   : > { %v892_v38 = vpop.f32.mrf.mxu0 }
 0x236   : > { %v756_v49 = vpop.f32.mrf.mxu2 }
 0x237   : > { %v784_v1 = vadd.f32 %v783_v47, %v756_v49 }
 0x239   : > { %v797_v2 = vadd.f32 %v791_v0, %v784_v1  ;;  %v954_v18 = vpop.f32.mrf.mxu0 }
 0x23b   : > { %799 = vst [vmem:[%s407_s25] sm:$0xff] %v797_v2 }
 0x23e   : > { %v759_v4 = vpop.f32.mrf.mxu2  ;;  %v870_v9 = vpop.f32.mrf.mxu3 }
 0x23f   : > { %v787_v6 = vadd.f32 %v786_v3, %v759_v4 }
 0x241   : > { %v798_v7 = vadd.f32 %v795_v5, %v787_v6 }
 0x243   : > { %800 = vst [vmem:[%s407_s25 + $0x8] sm:$0xff] %v798_v7 }
 0x246   : > { %v846_v10 = vpop.f32.mrf.mxu2  ;;  %v932_v13 = vpop.f32.mrf.mxu3 }
 0x247   : > { %v847_v11 = vadd.f32 %v846_v10, %v824_v8 }
 0x249   : > { %v873_v12 = vadd.f32 %v870_v9, %v847_v11 }
 0x24b   : > { %874 = vst [vmem:[%s407_s25 + $0x10] sm:$0xff] %v873_v12 }
 0x24e   : > { %v912_v15 = vpop.f32.mrf.mxu2  ;;  %v994_v21 = vpop.f32.mrf.mxu3 }
 0x24f   : > { %v913_v16 = vadd.f32 %v912_v15, %v892_v38 }
 0x251   : > { %v935_v17 = vadd.f32 %v932_v13, %v913_v16 }
 0x253   : > { %936 = vst [vmem:[%s407_s25 + $0x18] sm:$0xff] %v935_v17 }
 0x256   : > { %v974_v19 = vpop.f32.mrf.mxu2 }
 0x257   : > { %v975_v20 = vadd.f32 %v974_v19, %v954_v18 }
 0x259   : > { %v997_v22 = vadd.f32 %v994_v21, %v975_v20 }
 0x25b   : > { %998 = vst [vmem:[%s407_s25 + $0x20] sm:$0xff] %v997_v22 }
 0x25c   : > { %1243 = shalt.err (!%p1240_p7)
}
 0x25d   : > { %s1287_s27 = smov 128   ;;  %s1288_s25 = smov 256  }
 0x25e   : > { %s1289_s17 = smov 8  }
 0x25f   : > { %1144 = dma.vmem_to_hbm [thread:$0]  (%p1379_p6), %s1012_s21, 640, %s1014_s23, %s1000_s22, %s1287_s27, %s1288_s25, %s1289_s17  }
 0x260 PF: > { %s1028_s28 = sand.u32 1, %s1266_s30   ;;  %p1147_p10 = pnand %p1108_p9, %p1383_p8 }
 0x261   : > { %s1029_s13 = scalar_lea.sflag [#allocation4], %s1028_s28 }
 0x262   : > { %p1148_p11 = pneg %p1147_p10 }
 0x264   : > { %1261 = dma.done.wait (%p1148_p11), %s1029_s13, 640  }
 0x265   : > { %1263 = vsyncadd (%p1148_p11), %s1029_s13, 4294966656  ;;  %p19_p12 = scmp.ge.s32.totalorder %s1365_s15, 4   ;;  %s1598_s30 = smov %s1270_s10 }
 0x266   : > { %s1599_s10 = smov %s1274_s11  ;;  %s1600_s11 = smov %s1377_s18 }
 0x267   : > { %s1601_s12 = smov %s1365_s15  ;;  %21 = sbr.rel (!%p19_p12) target bundleno = 3 (0x3), region = 140 }
 0x26c   :  { %1035 = vsyncpa [#allocation4], 1 }
 0x26d   :  { %1037 = vsyncpa [#allocation4 + $0x1], 1 }

</bundles_post_ra>
